<compile_context>
chip_gen: v7x
topology: tpu7x:2x2x1
jax: 0.10.0
libtpu: 0.0.40
codegen_flags: <defaults>
</compile_context>

<pallas_src>
import functools

import jax
import jax.numpy as jnp
from jax.experimental import pallas as pl
from jax.experimental.pallas import tpu as pltpu

EPS_PPO = 1e-05
_LANES = 128


def _cdiv(a, b):
    return -(-a // b)


# ----------------------------------------------------------------------------
# Kernel 1: normalized advantages (lane-dense, cheap mask, two-pass stats)
# ----------------------------------------------------------------------------
def _advantages_kernel(ret_ref, vp_ref, out_ref, *, n_valid, normalize):
    adv_raw = ret_ref[...] - vp_ref[...]
    if not normalize:
        # invalid tail entries (last rollout step + pads) are sliced away by
        # the wrapper; no mask needed on this path.
        out_ref[...] = adv_raw
        return

    shape = out_ref.shape  # (R, 128) lane-dense
    full_rows, rem = divmod(n_valid, shape[1])
    # Cheap threshold mask (replaces idx = row*128+lane; idx < n_valid):
    # zero-padded lanes already give adv_raw == 0; the mask only has to kill
    # the last-rollout-step entries for the statistics.
    row = jax.lax.broadcasted_iota(jnp.int32, shape, 0)
    if rem == 0:
        valid = row < full_rows
    else:
        lane = jax.lax.broadcasted_iota(jnp.int32, shape, 1)
        valid = (row < full_rows) | ((row == full_rows) & (lane < rem))

    adv = jnp.where(valid, adv_raw, 0.0)
    # Two-pass statistics (mean first, then centered sum-of-squares): better
    # f32 robustness than ss - s*mean; data is VMEM-resident so the second
    # pass is pure VPU work with slack (kernel is launch/DMA-latency bound).
    mean = jnp.sum(adv) * (1.0 / n_valid)
    centered = jnp.where(valid, adv_raw - mean, 0.0)
    if n_valid > 1:
        var = jnp.sum(centered * centered) * (1.0 / (n_valid - 1))
    else:
        # n_valid == 1: torch .std() would be NaN; we intentionally return a
        # finite result (std = 0 -> divide by EPS_PPO).
        var = jnp.zeros((), jnp.float32)
    inv = 1.0 / (jnp.sqrt(var) + EPS_PPO)  # single scalar divide
    # Unmasked broadcast write: invalid tail entries get garbage values but
    # are sliced away in the wrapper, so no per-element select is needed.
    out_ref[...] = (adv_raw - mean) * inv


def get_advantages(returns, value_preds, use_normalized_advantage=True):
    """returns, value_preds: (T+1, N) float32 (standard contiguous layout —
    the flatten below relies on row-major order so the last rollout step sits
    at the tail of the flattened array). Output: (T, N) float32."""
    returns = jnp.asarray(returns, jnp.float32)
    value_preds = jnp.asarray(value_preds, jnp.float32)
    t_plus_1, n_env = returns.shape
    t_steps = t_plus_1 - 1
    n_valid = t_steps * n_env            # valid advantage elements
    total = t_plus_1 * n_env             # full flattened rollout size
    rows = _cdiv(total, _LANES)
    pad = rows * _LANES - total

    # Flatten the FULL arrays (no [:-1] slice copy); zero-pad to lane-dense.
    ret_flat = returns.reshape(total)
    vp_flat = value_preds.reshape(total)
    if pad:
        ret_flat = jnp.pad(ret_flat, (0, pad))
        vp_flat = jnp.pad(vp_flat, (0, pad))
    ret2 = ret_flat.reshape(rows, _LANES)
    vp2 = vp_flat.reshape(rows, _LANES)

    kernel = functools.partial(
        _advantages_kernel, n_valid=n_valid, normalize=use_normalized_advantage
    )

    # NO grid: whole arrays resident in VMEM, single-buffered, no pipeline
    # prologue/epilogue.  VMEM guard for v7x (32 MiB scoped default, 64 MiB
    # physical): raise the limit for large rollouts.
    vmem_bytes = 3 * rows * _LANES * 4
    call_kwargs = {}
    if vmem_bytes > 24 * 1024 * 1024:
        # TODO(synk): switch to a two-phase row-tiled grid (stats pass then
        # normalize pass) once rollouts approach the v7x physical VMEM.
        call_kwargs["compiler_params"] = pltpu.CompilerParams(
            vmem_limit_bytes=min(vmem_bytes + (8 << 20), 96 << 20)
        )

    out = pl.pallas_call(
        kernel,
        out_shape=jax.ShapeDtypeStruct((rows, _LANES), jnp.float32),
        in_specs=[pl.BlockSpec(memory_space=pltpu.MemorySpace.VMEM)] * 2,
        out_specs=pl.BlockSpec(memory_space=pltpu.MemorySpace.VMEM),
        **call_kwargs,
    )(ret2, vp2)
    return out.reshape(rows * _LANES)[:n_valid].reshape(t_steps, n_env)


# ----------------------------------------------------------------------------
# Kernel 2: PPO clipped losses — packed inputs, one DMA per grid step,
# optional grouping of G mini-batches per step, grid marked "parallel".
# ----------------------------------------------------------------------------
def _ppo_loss_kernel(
    ent_ref,          # SMEM (M_pad,)  f32: dist_entropy per mini-batch
    obj_ref,          # SMEM (M_pad,)  f32: obj_recog_loss per mini-batch
    packed_ref,       # VMEM (G, 6, R, 128): [values, vpred, ret, logp,
                      #                       old_logp, adv] lane-dense
    out_ref,          # VMEM (G, 1, 128): lanes 0/1/2 = value, action, total
    *,
    group_size,
    batch_elems,
    clip_param,
    value_loss_coef,
    entropy_coef,
    obj_recog_loss_coef,
    use_clipped_value_loss,
):
    inv_n = 1.0 / batch_elems            # true (unpadded) mini-batch size
    base = pl.program_id(0) * group_size
    # hoist the lane iota out of the per-batch loop (broadcasts aren't CSE'd)
    lane = jax.lax.broadcasted_iota(jnp.int32, (1, 1, _LANES), 2)

    for gi in range(group_size):         # static unrolled loop
        values = packed_ref[gi, 0]
        vpred = packed_ref[gi, 1]
        ret = packed_ref[gi, 2]
        logp = packed_ref[gi, 3]
        old_logp = packed_ref[gi, 4]
        adv = packed_ref[gi, 5]

        # ---- action (policy) loss ----  (pads: ratio=exp(0)=1, adv=0 -> 0)
        ratio = jnp.exp(logp - old_logp)
        surr1 = ratio * adv
        surr2 = jnp.clip(ratio, 1.0 - clip_param, 1.0 + clip_param) * adv
        action_loss = -jnp.sum(jnp.minimum(surr1, surr2)) * inv_n

        # ---- value loss ----  (pads: (0-0)^2 = 0)
        if use_clipped_value_loss:
            vpred_clipped = vpred + jnp.clip(
                values - vpred, -clip_param, clip_param
            )
            vl = (values - ret) ** 2
            vlc = (vpred_clipped - ret) ** 2
            value_loss = 0.5 * jnp.sum(jnp.maximum(vl, vlc)) * inv_n
        else:
            value_loss = 0.5 * jnp.sum((ret - values) ** 2) * inv_n

        entropy = ent_ref[base + gi]
        obj_recog_loss = obj_ref[base + gi]
        total_loss = (
            value_loss * value_loss_coef
            + action_loss
            - entropy * entropy_coef
            + obj_recog_loss * obj_recog_loss_coef
        )

        # one lane-dense (1,1,128) row per mini-batch: unmasked 128-lane store
        row = jnp.where(
            lane == 0,
            value_loss,
            jnp.where(lane == 1, action_loss,
                      jnp.where(lane == 2, total_loss, 0.0)),
        )
        out_ref[pl.ds(gi, 1)] = row


def ppo_losses_batched(
    values,
    value_preds_batch,
    return_batch,
    action_log_probs,
    old_action_log_probs_batch,
    adv_targ,
    dist_entropy,
    obj_recog_loss=None,
    *,
    clip_param,
    value_loss_coef,
    entropy_coef,
    obj_recog_loss_coef=0.0,
    use_clipped_value_loss=True,
    mini_batches_per_step=1,
):
    """All mini-batch tensors: (M, B) or (M, B, 1); dist_entropy/obj: (M,).

    Returns (value_loss, action_loss, total_loss), each shaped (M,).
    One pallas_call for every mini-batch; the 6 tensors are packed into one
    lane-dense (M, 6, R, 128) buffer (single pad, single DMA per grid step).
    For peak bandwidth make B a multiple of 128 upstream so the pad is a
    no-op; pads are masked exactly (contribute 0) either way.
    `mini_batches_per_step` processes G mini-batches per grid step (useful
    when M is large and B is tiny).
    """

    def _mb(x):
        x = jnp.asarray(x, jnp.float32)
        if x.ndim == 3 and x.shape[-1] == 1:
            x = x[..., 0]
        return x

    tensors = [
        _mb(t)
        for t in (
            values,
            value_preds_batch,
            return_batch,
            action_log_probs,
            old_action_log_probs_batch,
            adv_targ,
        )
    ]
    num_mb, batch = tensors[0].shape
    rows = _cdiv(batch, _LANES)
    lane_pad = rows * _LANES - batch

    group = max(1, min(int(mini_batches_per_step), num_mb))
    num_steps = _cdiv(num_mb, group)
    m_pad_total = num_steps * group
    m_pad = m_pad_total - num_mb

    # Pack the 6 tensors once -> (M, 6, B); ONE pad for everything.
    packed = jnp.stack(tensors, axis=1)
    if lane_pad or m_pad:
        packed = jnp.pad(packed, ((0, m_pad), (0, 0), (0, lane_pad)))
    packed = packed.reshape(m_pad_total, 6, rows, _LANES)

    ent = jnp.reshape(jnp.asarray(dist_entropy, jnp.float32), (num_mb,))
    if obj_recog_loss is None:
        obj = jnp.zeros((num_mb,), jnp.float32)
    else:
        obj = jnp.reshape(jnp.asarray(obj_recog_loss, jnp.float32), (num_mb,))
    if m_pad:
        ent = jnp.pad(ent, (0, m_pad))
        obj = jnp.pad(obj, (0, m_pad))

    kernel = functools.partial(
        _ppo_loss_kernel,
        group_size=group,
        batch_elems=batch,
        clip_param=float(clip_param),
        value_loss_coef=float(value_loss_coef),
        entropy_coef=float(entropy_coef),
        obj_recog_loss_coef=float(obj_recog_loss_coef),
        use_clipped_value_loss=use_clipped_value_loss,
    )

    out = pl.pallas_call(
        kernel,
        out_shape=jax.ShapeDtypeStruct((m_pad_total, 1, _LANES), jnp.float32),
        grid=(num_steps,),
        in_specs=[
            pl.BlockSpec(memory_space=pltpu.MemorySpace.SMEM),  # dist_entropy
            pl.BlockSpec(memory_space=pltpu.MemorySpace.SMEM),  # obj_recog
            pl.BlockSpec((group, 6, rows, _LANES), lambda g: (g, 0, 0, 0)),
        ],
        out_specs=pl.BlockSpec((group, 1, _LANES), lambda g: (g, 0, 0)),
        compiler_params=pltpu.CompilerParams(
            # TODO(synk): try pltpu.CORE_PARALLEL on v7x (2 TCs) when M >= 2.
            dimension_semantics=("parallel",)
        ),
    )(ent, obj, packed)

    return out[:num_mb, 0, 0], out[:num_mb, 0, 1], out[:num_mb, 0, 2]


def ppo_losses(
    values,
    value_preds_batch,
    return_batch,
    action_log_probs,
    old_action_log_probs_batch,
    adv_targ,
    dist_entropy,
    obj_recog_loss=None,
    *,
    clip_param,
    value_loss_coef,
    entropy_coef,
    obj_recog_loss_coef=0.0,
    use_clipped_value_loss=True,
):
    """Single mini-batch convenience wrapper. Batch tensors: (B, 1) or (B,)."""

    def _add_mb(x):
        x = jnp.asarray(x, jnp.float32)
        if x.ndim == 2 and x.shape[-1] == 1:
            x = x[:, 0]
        return x[None, :]

    args = [
        _add_mb(t)
        for t in (
            values,
            value_preds_batch,
            return_batch,
            action_log_probs,
            old_action_log_probs_batch,
            adv_targ,
        )
    ]
    ent = jnp.reshape(jnp.asarray(dist_entropy, jnp.float32), (1,))
    obj = (
        None
        if obj_recog_loss is None
        else jnp.reshape(jnp.asarray(obj_recog_loss, jnp.float32), (1,))
    )
    vl, al, tl = ppo_losses_batched(
        *args,
        ent,
        obj,
        clip_param=clip_param,
        value_loss_coef=value_loss_coef,
        entropy_coef=entropy_coef,
        obj_recog_loss_coef=obj_recog_loss_coef,
        use_clipped_value_loss=use_clipped_value_loss,
    )
    return vl[0], al[0], tl[0]


# ----------------------------------------------------------------------------
# Reference (pure JAX) implementations for validation
# ----------------------------------------------------------------------------
def _ref_advantages(returns, value_preds, normalize=True):
    adv = returns[:-1] - value_preds[:-1]
    if not normalize:
        return adv
    mean = adv.mean()
    std = jnp.sqrt(jnp.sum((adv - mean) ** 2) / (adv.size - 1))
    return (adv - mean) / (std + EPS_PPO)


def _ref_losses(values, vpred, ret, logp, old_logp, adv, ent, obj, clip, vcoef,
                ecoef, ocoef):
    ratio = jnp.exp(logp - old_logp)
    surr1 = ratio * adv
    surr2 = jnp.clip(ratio, 1.0 - clip, 1.0 + clip) * adv
    action_loss = -jnp.minimum(surr1, surr2).mean()
    vpc = vpred + jnp.clip(values - vpred, -clip, clip)
    value_loss = 0.5 * jnp.maximum((values - ret) ** 2, (vpc - ret) ** 2).mean()
    total = value_loss * vcoef + action_loss - ent * ecoef + obj * ocoef
    return value_loss, action_loss, total


if __name__ == "__main__":
    key = jax.random.PRNGKey(0)
    ks = jax.random.split(key, 10)

    # rollout shapes: (num_steps+1, num_envs) = (9, 2)
    T, N = 8, 2
    returns = jax.random.normal(ks[0], (T + 1, N), dtype=jnp.float32)
    value_preds = jax.random.normal(ks[1], (T + 1, N), dtype=jnp.float32)

    # --- advantages kernel ---
    adv = get_advantages(returns, value_preds, use_normalized_advantage=True)
    adv = jax.block_until_ready(adv)
    adv_ref = _ref_advantages(returns, value_preds, True)
    assert adv.shape == (T, N)
    assert jnp.allclose(adv, adv_ref, atol=1e-5, rtol=1e-5), "advantages mismatch"

    adv_raw = get_advantages(returns, value_preds, use_normalized_advantage=False)
    adv_raw = jax.block_until_ready(adv_raw)
    assert jnp.allclose(
        adv_raw, returns[:-1] - value_preds[:-1], atol=1e-6, rtol=1e-6
    ), "raw advantages mismatch"

    # mini-batch data: M mini-batches of B = T*N elements each
    M, B = 3, T * N
    values_all = jax.random.normal(ks[2], (M, B), dtype=jnp.float32)
    vpred_all = jax.random.normal(ks[3], (M, B), dtype=jnp.float32)
    ret_all = jax.random.normal(ks[4], (M, B), dtype=jnp.float32)
    logp_all = -jnp.abs(jax.random.normal(ks[5], (M, B), dtype=jnp.float32))
    old_logp_all = -jnp.abs(jax.random.normal(ks[6], (M, B), dtype=jnp.float32))
    advt_all = jax.random.normal(ks[7], (M, B), dtype=jnp.float32)
    ent_all = jnp.abs(jax.random.normal(ks[8], (M,), dtype=jnp.float32))
    obj_all = jnp.abs(jax.random.normal(ks[9], (M,), dtype=jnp.float32))

    clip_param, value_loss_coef, entropy_coef, obj_coef = 0.2, 0.5, 0.01, 0.25

    # --- single mini-batch path ((B, 1) tensors, scalar entropy) ---
    vloss, aloss, tloss = ppo_losses(
        values_all[0][:, None],
        vpred_all[0][:, None],
        ret_all[0][:, None],
        logp_all[0][:, None],
        old_logp_all[0][:, None],
        advt_all[0][:, None],
        ent_all[0],
        obj_all[0],
        clip_param=clip_param,
        value_loss_coef=value_loss_coef,
        entropy_coef=entropy_coef,
        obj_recog_loss_coef=obj_coef,
        use_clipped_value_loss=True,
    )
    tloss = jax.block_until_ready(tloss)
    vref, aref, tref = _ref_losses(
        values_all[0], vpred_all[0], ret_all[0], logp_all[0], old_logp_all[0],
        advt_all[0], ent_all[0], obj_all[0],
        clip_param, value_loss_coef, entropy_coef, obj_coef,
    )
    assert jnp.allclose(vloss, vref, atol=1e-5, rtol=1e-5), "value_loss mismatch"
    assert jnp.allclose(aloss, aref, atol=1e-5, rtol=1e-5), "action_loss mismatch"
    assert jnp.allclose(tloss, tref, atol=1e-5, rtol=1e-5), "total_loss mismatch"

    # --- all mini-batches in ONE pallas_call (grid=(M,), parallel) ---
    vb, ab, tb = ppo_losses_batched(
        values_all, vpred_all, ret_all, logp_all, old_logp_all, advt_all,
        ent_all, obj_all,
        clip_param=clip_param,
        value_loss_coef=value_loss_coef,
        entropy_coef=entropy_coef,
        obj_recog_loss_coef=obj_coef,
        use_clipped_value_loss=True,
    )
    tb = jax.block_until_ready(tb)

    # --- grouped variant: 2 mini-batches per grid step (exercises M padding)
    vg, ag, tg = ppo_losses_batched(
        values_all, vpred_all, ret_all, logp_all, old_logp_all, advt_all,
        ent_all, obj_all,
        clip_param=clip_param,
        value_loss_coef=value_loss_coef,
        entropy_coef=entropy_coef,
        obj_recog_loss_coef=obj_coef,
        use_clipped_value_loss=True,
        mini_batches_per_step=2,
    )
    tg = jax.block_until_ready(tg)

    for m in range(M):
        vr, ar, tr = _ref_losses(
            values_all[m], vpred_all[m], ret_all[m], logp_all[m],
            old_logp_all[m], advt_all[m], ent_all[m], obj_all[m],
            clip_param, value_loss_coef, entropy_coef, obj_coef,
        )
        assert jnp.allclose(vb[m], vr, atol=1e-5, rtol=1e-5), "batched value mismatch"
        assert jnp.allclose(ab[m], ar, atol=1e-5, rtol=1e-5), "batched action mismatch"
        assert jnp.allclose(tb[m], tr, atol=1e-5, rtol=1e-5), "batched total mismatch"
        assert jnp.allclose(vg[m], vr, atol=1e-5, rtol=1e-5), "grouped value mismatch"
        assert jnp.allclose(ag[m], ar, atol=1e-5, rtol=1e-5), "grouped action mismatch"
        assert jnp.allclose(tg[m], tr, atol=1e-5, rtol=1e-5), "grouped total mismatch"

    print("KERNEL_OK")
</pallas_src>

<mosaic_0001>
module attributes {stable_mosaic.version = 11 : i64} {
  func.func @_advantages_kernel(%arg0: memref<1x128xf32, #tpu.memory_space<vmem>>, %arg1: memref<1x128xf32, #tpu.memory_space<vmem>>, %arg2: memref<1x128xf32, #tpu.memory_space<vmem>>) attributes {dimension_semantics = [], scalar_prefetch = 0 : i64, scratch_operands = 0 : i64, tpu.core_type = #tpu.core_type<tc>} {
    %c0 = arith.constant 0 : index
    %c0_0 = arith.constant 0 : index
    %0 = vector.load %arg0[%c0, %c0_0] : memref<1x128xf32, #tpu.memory_space<vmem>>, vector<1x128xf32>
    %c0_1 = arith.constant 0 : index
    %c0_2 = arith.constant 0 : index
    %1 = vector.load %arg1[%c0_1, %c0_2] : memref<1x128xf32, #tpu.memory_space<vmem>>, vector<1x128xf32>
    %2 = arith.subf %0, %1 : vector<1x128xf32>
    %3 = tpu.iota {dimensions = array<i32: 0>} : vector<1x128xi32>
    %4 = tpu.iota {dimensions = array<i32: 1>} : vector<1x128xi32>
    %c0_i32 = arith.constant 0 : i32
    %5 = vector.broadcast %c0_i32 : i32 to vector<1x128xi32>
    %6 = arith.cmpi slt, %3, %5 : vector<1x128xi32>
    %c0_i32_3 = arith.constant 0 : i32
    %7 = vector.broadcast %c0_i32_3 : i32 to vector<1x128xi32>
    %8 = arith.cmpi eq, %3, %7 : vector<1x128xi32>
    %c16_i32 = arith.constant 16 : i32
    %9 = vector.broadcast %c16_i32 : i32 to vector<1x128xi32>
    %10 = arith.cmpi slt, %4, %9 : vector<1x128xi32>
    %11 = arith.andi %8, %10 : vector<1x128xi1>
    %12 = arith.ori %6, %11 : vector<1x128xi1>
    %cst = arith.constant 0.000000e+00 : f32
    %13 = vector.broadcast %cst : f32 to vector<1x128xf32>
    %14 = arith.select %12, %2, %13 : vector<1x128xi1>, vector<1x128xf32>
    %15 = vector.shape_cast %14 : vector<1x128xf32> to vector<1x1x128xf32>
    %cst_4 = arith.constant dense<0.000000e+00> : vector<1xf32>
    %16 = vector.multi_reduction <add>, %15, %cst_4 [1, 2] : vector<1x1x128xf32> to vector<1xf32>
    %17 = vector.shape_cast %16 : vector<1xf32> to vector<1x1x1xf32>
    %18 = vector.extract %17[0, 0, 0] : f32 from vector<1x1x1xf32>
    %cst_5 = arith.constant 6.250000e-02 : f32
    %19 = arith.mulf %18, %cst_5 : f32
    %20 = vector.broadcast %19 : f32 to vector<1x128xf32>
    %21 = arith.subf %2, %20 : vector<1x128xf32>
    %cst_6 = arith.constant 0.000000e+00 : f32
    %22 = vector.broadcast %cst_6 : f32 to vector<1x128xf32>
    %23 = arith.select %12, %21, %22 : vector<1x128xi1>, vector<1x128xf32>
    %24 = arith.mulf %23, %23 : vector<1x128xf32>
    %25 = vector.shape_cast %24 : vector<1x128xf32> to vector<1x1x128xf32>
    %cst_7 = arith.constant dense<0.000000e+00> : vector<1xf32>
    %26 = vector.multi_reduction <add>, %25, %cst_7 [1, 2] : vector<1x1x128xf32> to vector<1xf32>
    %27 = vector.shape_cast %26 : vector<1xf32> to vector<1x1x1xf32>
    %28 = vector.extract %27[0, 0, 0] : f32 from vector<1x1x1xf32>
    %cst_8 = arith.constant 0.0666666701 : f32
    %29 = arith.mulf %28, %cst_8 : f32
    %30 = math.sqrt %29 : f32
    %cst_9 = arith.constant 9.99999974E-6 : f32
    %31 = arith.addf %30, %cst_9 : f32
    %cst_10 = arith.constant 1.000000e+00 : f32
    %32 = arith.divf %cst_10, %31 : f32
    %33 = vector.broadcast %19 : f32 to vector<1x128xf32>
    %34 = arith.subf %2, %33 : vector<1x128xf32>
    %35 = vector.broadcast %32 : f32 to vector<1x128xf32>
    %36 = arith.mulf %34, %35 : vector<1x128xf32>
    %c0_11 = arith.constant 0 : index
    %c0_12 = arith.constant 0 : index
    %37 = vector.load %arg2[%c0_11, %c0_12] : memref<1x128xf32, #tpu.memory_space<vmem>>, vector<1x128xf32>
    tpu.vector_store %arg2[%c0_11, %c0_12], %36 {strides = array<i32>} : memref<1x128xf32, #tpu.memory_space<vmem>>, vector<1x128xf32>,
    return
  }
}

</mosaic_0001>

<bundles_post_ra>
// kernel: tpu_custom_call.1
= control target key start
LH: loop header
LB: loop body
LE: loop exit
PB: predicated region body
PF: predicated region fallthrough
CT: control target
= control target key end

     0   :  { %7 = vsyncpa [#allocation3], 0  ;;  %s211_s0 = inlined_call_operand.hbm [shape: f32[1,128], index: 0, kind: input, shape index: {}]   ;;  %s212_s1 = inlined_call_operand.vmem [shape: f32[1,128], index: 1, kind: input, shape index: {}]   ;;  %s213_s2 = inlined_call_operand.hbm [shape: f32[1,128], index: 2, kind: output, shape index: {}]  }
   0x1   :  { %8 = vsyncpa [#allocation4], 0  ;;  %s157_s9 = smov [#allocation2]   ;;  %s109_s13 = scalar_lea.hbm %s211_s0, 16 }
   0x2   :  { %s15_s10 = sshll.u32 %s157_s9, 4  ;;  %p110_p0 = scmp.ne.s32.totalorder %s211_s0, %s109_s13  ;;  %s16_s10 = int_to_ptr.vmem [resolvable:$true] %s15_s10 }
   0x3   :  { %p113_p1 = scmp.lt.u32.totalorder %s109_s13, %s211_s0 }
   0x5   :  { %p115_p2 = pnand %p113_p1, %p110_p0 }
   0x7   :  { %118 = shalt.err (!%p115_p2)
}
   0x8   :  { %s119_s18 = scalar_lea.vmem %s16_s10, 16  ;;  %s123_s19 = scalar_lea.vmem %s16_s10, 32 }
   0x9   :  { %p120_p3 = scmp.ne.s32.totalorder %s16_s10, %s119_s18  ;;  %p124_p4 = scmp.lt.s32.totalorder %s16_s10, %s16_s10 }
   0xa   :  { %p125_p5 = scmp.lt.s32.totalorder %s123_s19, %s119_s18 }
   0xc   :  { %p126_p6 = por %p125_p5, %p124_p4 }
   0xe   :  { %p127_p7 = pnand %p126_p6, %p120_p3 }
  0x10   :  { %130 = shalt.err (!%p127_p7)
}
  0x11   :  { %18 = dma.hbm_to_vmem [thread:$0]  %s211_s0, 16, %s16_s10, [#allocation3]  }
  0x12   :  { %153 = dma.done.wait [#allocation3], 16  }
  0x13   :  { %154 = vsyncadd [#allocation3], 4294967280  ;;  %v27_v0 = vlaneseq  ;;  %v24_v3 = vld [vmem:[#allocation2] sm:$0x1]  ;;  %vm37_vm3 = vcmask 1040384   ;;  %s158_s28 = smov [#allocation5]  }
  0x14   :  { %v25_v4 = vld [vmem:[%s212_s1] sm:$0x1]  ;;  %s86_s29 = sshll.u32 %s158_s28, 4  ;;  %s87_s29 = int_to_ptr.vmem [resolvable:$true] %s86_s29 }
  0x15   :  { %v28_v1 = vshrl.u32 %v27_v0, 7  ;;  %v30_v2 = vand.u32 127, %v27_v0  ;;  %v26_v6 = vsub.f32 %v24_v3, %v25_v4  ;;  %s131_s3 = scalar_lea.vmem %s87_s29, 16  ;;  %s135_s4 = scalar_lea.vmem %s87_s29, 32 }
  0x16   :  { %p132_p8 = scmp.ne.s32.totalorder %s87_s29, %s131_s3  ;;  %p136_p9 = scmp.lt.s32.totalorder %s87_s29, %s87_s29 }
  0x17   :  { %vm32_vm0 = vcmp.eq.s32.totalorder %v28_v1, 0  ;;  %vm33_vm1 = vcmp.lt.s32.totalorder %v30_v2, 16  ;;  %p137_p10 = scmp.lt.s32.totalorder %s135_s4, %s131_s3 }
  0x18   :  { %vm189_vm2 = vmand %vm32_vm0, %vm33_vm1 }
  0x19   :  { %v36_v7 = vsel %vm189_vm2, %v26_v6, 0.0  ;;  %p138_p11 = por %p137_p10, %p136_p9 }
  0x1a   :  { %v38_v8 = vsel %vm37_vm3, %v36_v7, 0.0 }
  0x1b   :  { %39 = vadd.xlane.f32.xlu0 %v38_v8  ;;  %p139_p12 = pnand %p138_p11, %p132_p8 }
  0xa8   :  { %v40_v9 = vpop.xlane.xlu0 %39 }
  0xa9   :  { %v41_v10 = vrot.slane %v40_v9, 4 }
  0xab   :  { %v42_v11 = vadd.f32 %v41_v10, %v40_v9 }
  0xad   :  { %v43_v12 = vrot.slane %v42_v11, 2 }
  0xaf   :  { %v44_v13 = vadd.f32 %v43_v12, %v42_v11 }
  0xb1   :  { %v45_v14 = vrot.slane %v44_v13, 1 }
  0xb3   :  { %v46_v15 = vadd.f32 %v45_v14, %v44_v13 }
  0xb5   :  { %95 = vpush %v46_v15 }
  0xe6   :  { %s96_s0 = spop %95 }
  0xe7   :  { %s48_s1 = smul.f32 0.0625, %s96_s0 }
  0xe9   :  { %v49_v16 = vstv %s48_s1 }
  0xea   :  { %v50_v17 = vsub.f32 %v26_v6, %v49_v16 }
  0xec   :  { %v51_v18 = vsel %vm189_vm2, %v50_v17, 0.0 }
  0xed   :  { %v52_v19 = vmul.f32 %v51_v18, %v51_v18 }
  0xef   :  { %v53_v20 = vsel %vm37_vm3, %v52_v19, 0.0 }
  0xf0   :  { %54 = vadd.xlane.f32.xlu0 %v53_v20 }
 0x17d   :  { %v55_v21 = vpop.xlane.xlu0 %54 }
 0x17e   :  { %v56_v22 = vrot.slane %v55_v21, 4 }
 0x180   :  { %v57_v23 = vadd.f32 %v56_v22, %v55_v21 }
 0x182   :  { %v58_v24 = vrot.slane %v57_v23, 2 }
 0x184   :  { %v59_v25 = vadd.f32 %v58_v24, %v57_v23 }
 0x186   :  { %v60_v26 = vrot.slane %v59_v25, 1 }
 0x188   :  { %v61_v27 = vadd.f32 %v60_v26, %v59_v25 }
 0x18a   :  { %97 = vpush %v61_v27 }
 0x1bb   :  { %s98_s24 = spop %97 }
 0x1bc   :  { %s63_s25 = smul.f32 0.06666667, %s98_s24 }
 0x1be   :  { %v64_v28 = vstv %s63_s25 }
 0x1bf   :  { %105 = vrsqrt.f32 %v64_v28  ;;  %vm67_vm4 = vcmp.eq.f32.partialorder %v64_v28, inf  ;;  %v70_v31 = vand.u32 2147483648, %v64_v28  ;;  %vm69_vm5 = vcmp.eq.f32.partialorder %v64_v28, 0.0 }
 0x1c9   :  { %v106_v29 = vpop.eup %105 }
 0x1ca   :  { %v66_v30 = vmul.f32 %v106_v29, %v64_v28 }
 0x1cc   :  { %v68_v32 = vsel %vm67_vm4, %v64_v28, %v66_v30 }
 0x1cd   :  { %v71_v33 = vsel %vm69_vm5, %v70_v31, %v68_v32 }
 0x1ce   :  { %99 = vpush %v71_v33 }
 0x1ff   :  { %s100_s26 = spop %99 }
 0x200   :  { %s73_s27 = sadd.f32 1e-05, %s100_s26 }
 0x202   :  { %v74_v34 = vstv %s73_s27 }
 0x203   :  { %107 = vrcp.f32 %v74_v34 }
 0x20d   :  { %v108_v35 = vpop.eup %107 }
 0x20e   :  { %101 = vpush %v108_v35 }
 0x23f   :  { %s102_s30 = spop %101 }
 0x240   :  { %v77_v36 = vstv %s102_s30 }
 0x241   :  { %v78_v37 = vmul.f32 %v77_v36, %v50_v17 }
 0x243   :  { %79 = vst [vmem:[#allocation5] sm:$0x1] %v78_v37 }
 0x244   :  { %142 = shalt.err (!%p139_p12)
}
 0x245   :  { %s143_s7 = scalar_lea.hbm %s213_s2, 16 }
 0x246   :  { %p144_p13 = scmp.ne.s32.totalorder %s213_s2, %s143_s7  ;;  %p147_p0 = scmp.lt.u32.totalorder %s143_s7, %s213_s2 }
 0x248   :  { %p149_p1 = pnand %p147_p0, %p144_p13 }
 0x24a   :  { %152 = shalt.err (!%p149_p1)
}
 0x24b   :  { %89 = dma.vmem_to_hbm [thread:$0]  %s87_s29, 16, %s213_s2, [#allocation4]  }
 0x24c   :  { %155 = dma.done.wait [#allocation4], 16  }
 0x24d   :  { %156 = vsyncadd [#allocation4], 4294967280 }
 0x24e   :  { %93 = vsyncpa [#allocation3], 1 }
 0x24f   :  { %94 = vsyncpa [#allocation4], 1 }

</bundles_post_ra>
